<compile_context>
chip_gen: v7x
topology: tpu7x:2x2x1
jax: 0.10.0
libtpu: 0.0.40
codegen_flags: <defaults>
</compile_context>

<pallas_src>
import functools
import math

import jax
import jax.numpy as jnp
from jax import lax
from jax.experimental import pallas as pl
from jax.experimental.pallas import tpu as pltpu


def _affinity_kernel(x_ref, a_ref, y_ref, b_ref, o_ref, xa_ref, *, mm2_dtype):
    # x_ref: (tm, d)   a_ref: (d, d) whole-array VMEM   y_ref: (tn, d)
    # b_ref: (1,) SMEM scalar   o_ref: (tm, tn)   xa_ref: (tm, d) VMEM scratch

    # X_tile @ A_eff is shared by every Ny tile of this output row: compute it
    # only on the first Ny tile and reuse it from the VMEM scratch afterwards.
    # TODO(synk): when Ny/tn is tiny (<= 4) a separate XA pre-pass amortizes
    # better; kept in-kernel since it avoids an XA HBM round trip otherwise.
    @pl.when(pl.program_id(2) == 0)
    def _():
        xa = jnp.dot(x_ref[...], a_ref[...], preferred_element_type=jnp.float32)
        xa_ref[...] = xa.astype(xa_ref.dtype)

    # (tm, d) x (tn, d) contracted on d -> (tm, tn): native NT MXU path, no
    # materialized transpose of the Y tile; accumulation stays in f32.
    acc = lax.dot_general(
        xa_ref[...].astype(mm2_dtype),
        y_ref[...].astype(mm2_dtype),
        dimension_numbers=(((1,), (1,)), ((), ())),
        preferred_element_type=jnp.float32,
    )
    o_ref[...] = (acc + b_ref[0]).astype(o_ref.dtype)


def _round_up(n, m):
    return ((n + m - 1) // m) * m


def _vmem_capacity_bytes():
    try:
        return int(pltpu.get_tpu_info().vmem_capacity_bytes)
    except Exception:
        return 64 << 20  # conservative default: v7x per-TensorCore VMEM


def affinity_bifc(x, y, a3, fc_w, fc_b, *, tm=None, tn=None,
                  use_bf16_matmul=False):
    """AffinityBiFC forward.

    x: (B, Nx, d), y: (B, Ny, d), a3: (d, d, bd), fc_w: (bd,), fc_b: scalar.
    Returns S: (B, Nx, Ny)  (the fc output's unit channel squeezed).
    """
    B, Nx, d = x.shape
    By, Ny, d2 = y.shape
    assert By == B and d == d2 == a3.shape[0] == a3.shape[1]
    bd = a3.shape[2]
    assert fc_w.reshape(-1).shape[0] == bd

    # Exact parameter-space fold of the bd loop + Linear(bd, 1) head.
    a_eff = jnp.einsum(
        "dek,k->de", a3, fc_w.reshape(-1).astype(jnp.float32),
        precision=jax.lax.Precision.HIGHEST,
    ).astype(x.dtype)
    bias = jnp.asarray(fc_b, dtype=jnp.float32).reshape(1)

    in_item = jnp.dtype(x.dtype).itemsize
    out_dtype = x.dtype
    out_item = jnp.dtype(out_dtype).itemsize
    # NOTE: for bf16 inputs the cached X@A intermediate is kept in bf16 (MXU
    # rate on v6e/v7x) at a small, documented accuracy cost; f32 inputs keep f32.
    xa_dtype = jnp.float32 if x.dtype == jnp.float32 else x.dtype
    xa_item = jnp.dtype(xa_dtype).itemsize
    mm2_dtype = jnp.bfloat16 if use_bf16_matmul else xa_dtype

    # Per-generation VMEM budget (v7x: 64 MiB physical vs 128 MiB on v5e/v6e).
    vmem_cap = _vmem_capacity_bytes()
    budget = max(16 << 20, min(vmem_cap - (24 << 20), 96 << 20))

    # Fallbacks: tiny shapes pay more in per-step overhead + (8,128) padding
    # than they gain; an A_eff that cannot sit in VMEM needs a d-tiled variant.
    # TODO(synk): add a K-tiled (d-axis) grid variant for d*d*itemsize > budget/2.
    if (Nx < 128 or Ny < 128) or (d * d * in_item > budget // 2):
        xa = jnp.einsum("bnd,de->bne", x.astype(jnp.float32),
                        a_eff.astype(jnp.float32))
        s = jnp.einsum("bne,bme->bnm", xa, y.astype(jnp.float32)) + bias[0]
        return s.astype(out_dtype)

    def fits(tm_, tn_):
        need = ((2 * tm_ * d + 2 * tn_ * d + d * d) * in_item
                + 2 * tm_ * tn_ * out_item
                + tm_ * d * xa_item)
        return need <= budget

    # bf16 packs 2 rows per sublane -> keep tm a multiple of 16 (f32: 8).
    min_m = max(8, 32 // in_item)

    # tn: lane-dense (multiple of 128) output stores; minimize Ny padding and
    # prefer ~256 on ties.
    if tn is None:
        ny_opts = [t for t in (256, 512, 128) if fits(min_m, t)] or [128]
        best_pad = min(_round_up(Ny, t) for t in ny_opts)
        tn = next(t for t in ny_opts if _round_up(Ny, t) == best_pad)

    # tm: largest tile the VMEM budget allows -- Y is re-streamed from HBM
    # ceil(Nx/tm) times, so doubling tm halves the dominant HBM term.
    if tm is None:
        nx_cap = _round_up(Nx, min_m)
        tm = min_m
        for c in (2048, 1024, 512, 256, 128, 64, 32, 16, 8):
            if c % min_m or c > nx_cap or not fits(c, tn):
                continue
            if _round_up(Nx, c) > 1.25 * Nx and c > min_m:
                continue  # too much padded work for this tile
            tm = c
            break
        # Megacore: make sure both TensorCores (v7x) get at least one slot of
        # the parallel (b, i) axes.
        if (B * (_round_up(Nx, tm) // tm) < 2 and tm // 2 >= min_m
                and (tm // 2) % min_m == 0):
            tm //= 2

    nx_pad = _round_up(Nx, tm)
    ny_pad = _round_up(Ny, tn)
    x_p = x if nx_pad == Nx else jnp.pad(x, ((0, 0), (0, nx_pad - Nx), (0, 0)))
    y_p = y if ny_pad == Ny else jnp.pad(y, ((0, 0), (0, ny_pad - Ny), (0, 0)))
    n_i, n_j = nx_pad // tm, ny_pad // tn

    footprint = ((2 * tm * d + 2 * tn * d + d * d) * in_item
                 + 2 * tm * tn * out_item + tm * d * xa_item)
    vmem_limit = int(min(vmem_cap, max(32 << 20, footprint + (8 << 20))))

    cost = pl.CostEstimate(
        flops=2 * B * nx_pad * d * d + 2 * B * nx_pad * ny_pad * d,
        transcendentals=0,
        # X streamed once, Y re-streamed per Nx-tile row, A_eff fetched once.
        bytes_accessed=((B * nx_pad * d + B * n_i * ny_pad * d + d * d) * in_item
                        + B * nx_pad * ny_pad * out_item),
    )

    kernel = functools.partial(_affinity_kernel, mm2_dtype=mm2_dtype)

    out = pl.pallas_call(
        kernel,
        out_shape=jax.ShapeDtypeStruct((B, nx_pad, ny_pad), out_dtype),
        grid_spec=pltpu.PrefetchScalarGridSpec(
            num_scalar_prefetch=0,
            grid=(B, n_i, n_j),
            in_specs=[
                # Leading batch dim squeezed (None) -> kernel sees 2-D tiles.
                pl.BlockSpec((None, tm, d), lambda b, i, j: (b, i, 0)),
                # A_eff: one resident whole-array VMEM copy (constant across
                # the grid -> no double-buffering).
                pl.BlockSpec(memory_space=pltpu.MemorySpace.VMEM),
                pl.BlockSpec((None, tn, d), lambda b, i, j: (b, j, 0)),
                # Bias: scalar in SMEM, added on the scalar/VPU path.
                pl.BlockSpec(memory_space=pltpu.MemorySpace.SMEM),
            ],
            out_specs=pl.BlockSpec((None, tm, tn), lambda b, i, j: (b, i, j)),
            scratch_shapes=[pltpu.VMEM((tm, d), xa_dtype)],
        ),
        compiler_params=pltpu.CompilerParams(
            # The Ny-tile axis must run sequentially per (b, i) so the cached
            # X@A scratch stays valid; batch / Nx-tile axes feed both v7x cores.
            dimension_semantics=("parallel", "parallel", "arbitrary"),
            vmem_limit_bytes=vmem_limit,
        ),
        cost_estimate=cost,
    )(x_p, a_eff, y_p, bias)

    if nx_pad != Nx or ny_pad != Ny:
        out = out[:, :Nx, :Ny]
    return out


def init_affinity_bifc_params(key, d, bd, dtype=jnp.float32):
    # Matches AffinityBiFC.reset_parameters (A ~ U(-1/sqrt(d), 1/sqrt(d))) plus
    # PyTorch's default nn.Linear(bd, 1) init for the fc head.
    k_a, k_w, k_b = jax.random.split(key, 3)
    stdv = 1.0 / math.sqrt(d)
    a3 = jax.random.uniform(k_a, (d, d, bd), dtype=dtype, minval=-stdv, maxval=stdv)
    lim = 1.0 / math.sqrt(bd)
    fc_w = jax.random.uniform(k_w, (bd,), dtype=dtype, minval=-lim, maxval=lim)
    fc_b = jax.random.uniform(k_b, (), dtype=dtype, minval=-lim, maxval=lim)
    return a3, fc_w, fc_b


def reference_forward(x, y, a3, fc_w, fc_b):
    # Mirrors the PyTorch loop: bi[..., k] = X @ A[:, :, k] @ Y^T, followed by
    # the Linear(bd, 1) head (no trailing ReLU, per fc_lst[:-1]).
    bi = jnp.einsum("bnd,dek,bme->bnmk", x, a3, y,
                    precision=jax.lax.Precision.HIGHEST)
    return jnp.einsum("bnmk,k->bnm", bi, fc_w,
                      precision=jax.lax.Precision.HIGHEST) + fc_b


if __name__ == "__main__":
    key = jax.random.PRNGKey(0)
    k_p, k_x, k_y, k_x2, k_y2 = jax.random.split(key, 5)

    B, d, bd = 2, 64, 16
    A3, fc_w, fc_b = init_affinity_bifc_params(k_p, d, bd)

    # Case 1: 128-aligned shapes -> Pallas path, no padding.
    Nx, Ny = 128, 128
    X = jax.random.normal(k_x, (B, Nx, d), dtype=jnp.float32)
    Y = jax.random.normal(k_y, (B, Ny, d), dtype=jnp.float32)
    S = jax.block_until_ready(affinity_bifc(X, Y, A3, fc_w, fc_b))
    S_ref = reference_forward(X, Y, A3, fc_w, fc_b)
    assert S.shape == (B, Nx, Ny)
    assert jnp.allclose(S, S_ref, atol=2e-3, rtol=2e-3), \
        float(jnp.max(jnp.abs(S - S_ref)))

    # Case 2: ragged shapes -> exercises wrapper padding + output slice-back.
    Nx2, Ny2 = 192, 160
    X2 = jax.random.normal(k_x2, (B, Nx2, d), dtype=jnp.float32)
    Y2 = jax.random.normal(k_y2, (B, Ny2, d), dtype=jnp.float32)
    S2 = jax.block_until_ready(affinity_bifc(X2, Y2, A3, fc_w, fc_b))
    S2_ref = reference_forward(X2, Y2, A3, fc_w, fc_b)
    assert S2.shape == (B, Nx2, Ny2)
    assert jnp.allclose(S2, S2_ref, atol=2e-3, rtol=2e-3), \
        float(jnp.max(jnp.abs(S2 - S2_ref)))

    print("KERNEL_OK")
</pallas_src>

<mosaic_0001>
module attributes {stable_mosaic.version = 11 : i64} {
  func.func @_affinity_kernel(%arg0: i32, %arg1: i32, %arg2: i32, %arg3: memref<1x128x64xf32, #tpu.memory_space<vmem>>, %arg4: memref<64x64xf32, #tpu.memory_space<vmem>>, %arg5: memref<1x128x64xf32, #tpu.memory_space<vmem>>, %arg6: memref<1xf32, #tpu.memory_space<smem>>, %arg7: memref<1x128x128xf32, #tpu.memory_space<vmem>>, %arg8: memref<128x64xf32, #tpu.memory_space<vmem>>) attributes {dimension_semantics = [#tpu.dimension_semantics<parallel>, #tpu.dimension_semantics<parallel>, #tpu.dimension_semantics<arbitrary>], iteration_bounds = array<i64: 2, 1, 1>, scalar_prefetch = 0 : i64, scratch_operands = 1 : i64, tpu.core_type = #tpu.core_type<tc>, window_params = [{transform_indices = @transform_0, window_bounds = array<i64: 1, 128, 64>}, {pipeline_mode = #tpu.pipeline_mode<synchronous>, transform_indices = @transform_1, window_bounds = array<i64: 64, 64>}, {transform_indices = @transform_2, window_bounds = array<i64: 1, 128, 64>}, {transform_indices = @transform_3, window_bounds = array<i64: 1>}, {transform_indices = @transform_4, window_bounds = array<i64: 1, 128, 128>}]} {
    %c0_i32 = arith.constant 0 : i32
    %0 = arith.cmpi eq, %arg2, %c0_i32 : i32
    %1 = arith.extui %0 : i1 to i32
    %c0_i32_0 = arith.constant 0 : i32
    %2 = arith.cmpi ne, %1, %c0_i32_0 : i32
    scf.if %2 {
      %c0_9 = arith.constant 0 : index
      %c0_10 = arith.constant 0 : index
      %c0_11 = arith.constant 0 : index
      %13 = vector.load %arg3[%c0_9, %c0_10, %c0_11] : memref<1x128x64xf32, #tpu.memory_space<vmem>>, vector<1x128x64xf32>
      %14 = vector.shape_cast %13 : vector<1x128x64xf32> to vector<128x64xf32>
      %c0_12 = arith.constant 0 : index
      %c0_13 = arith.constant 0 : index
      %15 = vector.load %arg4[%c0_12, %c0_13] : memref<64x64xf32, #tpu.memory_space<vmem>>, vector<64x64xf32>
      %cst_14 = arith.constant dense<0.000000e+00> : vector<128x64xf32>
      %16 = tpu.matmul %14, %15, %cst_14 {dimension_numbers = #tpu.dot_dimension_numbers<[1], [0], [0], [1], [0, 0, 1, 1], [], []>} : vector<128x64xf32>, vector<64x64xf32>, vector<128x64xf32> -> vector<128x64xf32>
      %c0_15 = arith.constant 0 : index
      %c0_16 = arith.constant 0 : index
      %17 = vector.load %arg8[%c0_15, %c0_16] : memref<128x64xf32, #tpu.memory_space<vmem>>, vector<128x64xf32>
      tpu.vector_store %arg8[%c0_15, %c0_16], %16 {strides = array<i32>} : memref<128x64xf32, #tpu.memory_space<vmem>>, vector<128x64xf32>,
    } else {
    }
    %c0 = arith.constant 0 : index
    %c0_1 = arith.constant 0 : index
    %3 = vector.load %arg8[%c0, %c0_1] : memref<128x64xf32, #tpu.memory_space<vmem>>, vector<128x64xf32>
    %c0_2 = arith.constant 0 : index
    %c0_3 = arith.constant 0 : index
    %c0_4 = arith.constant 0 : index
    %4 = vector.load %arg5[%c0_2, %c0_3, %c0_4] : memref<1x128x64xf32, #tpu.memory_space<vmem>>, vector<1x128x64xf32>
    %5 = vector.shape_cast %4 : vector<1x128x64xf32> to vector<128x64xf32>
    %cst = arith.constant dense<0.000000e+00> : vector<128x128xf32>
    %6 = tpu.matmul %3, %5, %cst {dimension_numbers = #tpu.dot_dimension_numbers<[1], [1], [0], [0], [0, 0, 1, 0], [], []>} : vector<128x64xf32>, vector<128x64xf32>, vector<128x128xf32> -> vector<128x128xf32>
    %c0_5 = arith.constant 0 : index
    %7 = memref.load %arg6[%c0_5] : memref<1xf32, #tpu.memory_space<smem>>
    %8 = vector.broadcast %7 : f32 to vector<128x128xf32>
    %9 = arith.addf %6, %8 : vector<128x128xf32>
    %c0_6 = arith.constant 0 : index
    %c0_7 = arith.constant 0 : index
    %c0_8 = arith.constant 0 : index
    %10 = vector.load %arg7[%c0_6, %c0_7, %c0_8] : memref<1x128x128xf32, #tpu.memory_space<vmem>>, vector<1x128x128xf32>
    %11 = vector.shape_cast %10 : vector<1x128x128xf32> to vector<128x128xf32>
    %12 = vector.shape_cast %9 : vector<128x128xf32> to vector<1x128x128xf32>
    tpu.vector_store %arg7[%c0_6, %c0_7, %c0_8], %12 {strides = array<i32>} : memref<1x128x128xf32, #tpu.memory_space<vmem>>, vector<1x128x128xf32>,
    return
  }
  func.func @transform_0(%arg0: i32, %arg1: i32, %arg2: i32) -> (i32, i32, i32) {
    %c0_i32 = arith.constant 0 : i32
    %c0_i32_0 = arith.constant 0 : i32
    return %arg0, %arg1, %c0_i32 : i32, i32, i32
  }
  func.func @transform_1(%arg0: i32, %arg1: i32, %arg2: i32) -> (i32, i32) {
    %c0_i32 = arith.constant 0 : i32
    %c0_i32_0 = arith.constant 0 : i32
    %c0_i32_1 = arith.constant 0 : i32
    return %c0_i32, %c0_i32_0 : i32, i32
  }
  func.func @transform_2(%arg0: i32, %arg1: i32, %arg2: i32) -> (i32, i32, i32) {
    %c0_i32 = arith.constant 0 : i32
    %c0_i32_0 = arith.constant 0 : i32
    return %arg0, %arg2, %c0_i32 : i32, i32, i32
  }
  func.func @transform_3(%arg0: i32, %arg1: i32, %arg2: i32) -> i32 {
    %c0_i32 = arith.constant 0 : i32
    %c0_i32_0 = arith.constant 0 : i32
    return %c0_i32 : i32
  }
  func.func @transform_4(%arg0: i32, %arg1: i32, %arg2: i32) -> (i32, i32, i32) {
    %c0_i32 = arith.constant 0 : i32
    return %arg0, %arg1, %arg2 : i32, i32, i32
  }
}

</mosaic_0001>

<bundles_post_ra>
// kernel: tpu_custom_call.1
= control target key start
LH: loop header
LB: loop body
LE: loop exit
PB: predicated region body
PF: predicated region fallthrough
CT: control target
= control target key end

     0   :  { %s1706_s0 = inlined_call_operand.vmem [shape: f32[2,128,64], index: 0, kind: input, shape index: {}]   ;;  %s1707_s1 = inlined_call_operand.vmem [shape: f32[64,64], index: 1, kind: input, shape index: {}]   ;;  %s1708_s2 = inlined_call_operand.vmem [shape: f32[2,128,64], index: 2, kind: input, shape index: {}]   ;;  %s1709_s3 = inlined_call_operand.<no memory space> [shape: f32[1], index: 3, kind: input, shape index: {}]   ;;  %s1710_s4 = inlined_call_operand.hbm [shape: f32[2,128,128], index: 4, kind: output, shape index: {}]  }
   0x1   :  { %9 = sst [smem:[#allocation3]] %s1709_s3 }
   0x2   :  { %10 = vsyncpa [#allocation5], 0 }
   0x3   :  { %12 = vsyncpa [#allocation5 + $0x1], 0  ;;  %s1387_s17 = smov 0   ;;  %s1389_s18 = smov 0  }
   0x4   :  { %s1391_s19 = smov 0   ;;  %s1393_s20 = smov 0  }
   0x5   :  { %s1395_s21 = smov 0   ;;  %s1397_s22 = smov 0  }
   0x6 LB: > { %s921_s3 = sadd.s32 4294967295, %s1354_s22   ;;  %s922_s23 = sadd.s32 4294967294, %s1354_s22   ;;  %s1354_s22 = sphi %s1397_s22, %s18_s22   ;;  %s1350_s21 = sphi %s1395_s21, %s1719_s21   ;;  %s1346_s20 = sphi %s1393_s20, %s1718_s20   ;;  %s1342_s19 = sphi %s1391_s19, %s1717_s19   ;;  %s1338_s18 = sphi %s1389_s18, %s1716_s18   ;;  %s1334_s17 = sphi %s1387_s17, %s1715_s17  }
   0x7   : > { %s37_s24 = sadd.s32 1, %s1350_s21  ;;  %s146_s25 = sadd.s32 1, %s1342_s19 }
   0x8   : > { %p39_p0 = scmp.ge.s32.totalorder %s37_s24, 2  ;;  %p156_p1 = scmp.ne.s32.totalorder %s1342_s19, %s1338_s18 }
   0x9   : > { %p157_p2 = scmp.eq.s32.totalorder %s921_s3, 1  ;;  %p162_p3 = scmp.ne.s32.totalorder %s1338_s18, %s1334_s17 }
   0xa   : > { %s1721_s24 = smov (%p39_p0, %s37_s24), 0  ;;  %p163_p5 = scmp.eq.s32.totalorder %s922_s23, 1 }
   0xb   : > { %p1427_p4 = por %p157_p2, %p156_p1  ;;  %s139_s27 = ssub.s32 %s1350_s21, %s1721_s24 }
   0xc   : > { %p925_p6 = scmp.ge.s32.totalorder %s1354_s22, 1  ;;  %p144_p7 = scmp.eq.s32.totalorder %s139_s27, 0 }
   0xd   : > { %p1434_p8 = por %p163_p5, %p162_p3  ;;  %p213_p9 = scmp.lt.s32.totalorder %s1354_s22, 3 }
   0xe   : > { %s1440_s29 = scalar_select %p144_p7, %s1342_s19, %s146_s25  }
   0xf   : > { %p214_p10 = pnand %p925_p6, %p213_p9 }
  0x10   : > { %v293_v0 = vld [vmem:[%s1707_s1] sm:$0xff] (!%p214_p10)  ;;  %v294_v1 = vld [vmem:[%s1707_s1 + $0x8] sm:$0xff] (!%p214_p10)  ;;  %v295_v2 = vld [vmem:[%s1707_s1 + $0x10] sm:$0xff] (!%p214_p10)  ;;  %p253_p11 = scmp.lt.s32.totalorder (!%p214_p10), %s1346_s20, 1  ;;  %vm301_vm0 = vcmask (!%p214_p10), 523264   ;;  %s543_s11 = sld [smem:[#allocation3]] (!%p214_p10) }
  0x11   : > { %217 = sbr.rel (%p214_p10) target bundleno = 515 (0x203), region = 36  ;;  %v1139_v3 = vpack.c.bf16 (!%p214_p10), %v294_v1, %v293_v0  ;;  %v296_v4 = vld [vmem:[%s1707_s1 + $0x18] sm:$0xff] (!%p214_p10)  ;;  %v297_v6 = vld [vmem:[%s1707_s1 + $0x20] sm:$0xff] (!%p214_p10)  ;;  %v298_v7 = vld [vmem:[%s1707_s1 + $0x28] sm:$0xff] (!%p214_p10)  ;;  %s249_s12 = sand.u32 (!%p214_p10), 1, %s1338_s18  }
  0x12   : > { %v1143_v5 = vpack.c.bf16 (!%p214_p10), %v296_v4, %v295_v2  ;;  %v1147_v8 = vpack.c.bf16 (!%p214_p10), %v298_v7, %v297_v6  ;;  %v299_v9 = vld [vmem:[%s1707_s1 + $0x30] sm:$0xff] (!%p214_p10)  ;;  %v300_v10 = vld [vmem:[%s1707_s1 + $0x38] sm:$0xff] (!%p214_p10)  ;;  %vm1486_vm1 = vmpackc.low (!%p214_p10), %vm301_vm0, %vm301_vm0  ;;  %s926_s13 = sshll.u32 (!%p214_p10), %s249_s12, 7  ;;  %s986_s15 = sshll.u32 (!%p214_p10), %s1346_s20, 11 }
  0x13   : > { %1140 = vmatprep.subr.bf16.mxu0 (!%p214_p10), %v1139_v3  ;;  %v1151_v12 = vpack.c.bf16 (!%p214_p10), %v300_v10, %v299_v9  ;;  %s1631_s14 = scalar_lea.vmem (!%p214_p10), [#allocation4], %s926_s13  ;;  %s1652_s25 = scalar_lea.hbm (!%p214_p10), %s1710_s4, %s986_s15 }
  0x14   : > { %1142 = vmatpush3.bf16.msra.mxu0 (!%p214_p10), %v1139_v3  ;;  %s1356_s30 = smov (!%p214_p10), [#allocation4]  }
  0x15   : > { %1144 = vmatprep.subr.bf16.mxu0 (!%p214_p10), %v1143_v5  ;;  %s1280_s5 = sshll.u32 (!%p214_p10), %s1356_s30, 4  ;;  %s1281_s5 = int_to_ptr.vmem [resolvable:$false] %s1280_s5 }
  0x16   : > { %s1282_s6 = scalar_lea.vmem (!%p214_p10), %s1281_s5, 4096 }
  0x18   : > { %s254_s16 = scalar_select %p253_p11, %s1346_s20, 1  ;;  %1146 = vmatpush3.bf16.msra.mxu0 %v1143_v5 }
  0x19   : > { %1148 = vmatprep.subr.bf16.mxu0 %v1147_v8  ;;  %s1660_s20 = scalar_lea.sflag [#allocation5], %s249_s12 }
  0x1a   : > { %s984_s3 = sshll.u32 %s254_s16, 7  ;;  %s820_s16 = sshll.u32 %s1631_s14, 4  ;;  %s1654_s16 = int_to_ptr.vmem [resolvable:$true] %s820_s16 }
  0x1b   : > { %s1465_s27 = scalar_lea.vmem %s1706_s0, %s984_s3  ;;  %s1478_s10 = scalar_lea.vmem %s1708_s2, %s984_s3 }
  0x1c   : > { %v277_v11 = vld [vmem:[%s1465_s27] sm:$0xff]  ;;  %v528_v14 = vld [vmem:[%s1478_s10 + $0x8] sm:$0xff]  ;;  %1150 = vmatpush3.bf16.msra.mxu0 %v1147_v8  ;;  %v529_v16 = vld [vmem:[%s1478_s10 + $0x10] sm:$0xff]  ;;  %p1283_p1 = scmp.lt.s32.totalorder %s1654_s16, %s1281_s5 }
  0x1d   : > { %1059 = vmatprep.mubr.msk.f32.mxu0 %vm301_vm0, %v277_v11  ;;  %v527_v13 = vld [vmem:[%s1478_s10] sm:$0xff]  ;;  %v530_v17 = vld [vmem:[%s1478_s10 + $0x18] sm:$0xff]  ;;  %1152 = vmatprep.subr.bf16.mxu0 %v1151_v12  ;;  %v278_v20 = vld [vmem:[%s1465_s27 + $0x8] sm:$0xff] }
  0x1e   : > { %v1155_v15 = vpack.c.bf16 %v528_v14, %v527_v13  ;;  %v1161_v19 = vpack.c.bf16 %v530_v17, %v529_v16  ;;  %v279_v21 = vld [vmem:[%s1465_s27 + $0x10] sm:$0xff]  ;;  %v531_v22 = vld [vmem:[%s1478_s10 + $0x20] sm:$0xff]  ;;  %v532_v23 = vld [vmem:[%s1478_s10 + $0x28] sm:$0xff] }
  0x1f   : > { %v280_v24 = vld [vmem:[%s1465_s27 + $0x18] sm:$0xff]  ;;  %v281_v25 = vld [vmem:[%s1465_s27 + $0x20] sm:$0xff]  ;;  %v1167_v26 = vpack.c.bf16 %v532_v23, %v531_v22  ;;  %v282_v27 = vld [vmem:[%s1465_s27 + $0x28] sm:$0xff] }
  0x20   : > { %1203 = vmatprep.subr.msk.bf16.mxu1 %vm1486_vm1, %v1155_v15  ;;  %1154 = vmatpush3.bf16.msra.mxu0 %v1151_v12  ;;  %v283_v28 = vld [vmem:[%s1465_s27 + $0x30] sm:$0xff]  ;;  %v534_v30 = vld [vmem:[%s1478_s10 + $0x38] sm:$0xff]  ;;  %v285_v32 = vld [vmem:[%s1465_s27 + $0x40] sm:$0xff] }
  0x21   : > { %1211 = vmatpush3.bf16.xpose.msk.msra.mxu1 %vm1486_vm1, %v1155_v15  ;;  %1157 = vmatprep.subr.msk.bf16.mxu0 %vm1486_vm1, %v1155_v15  ;;  %v533_v29 = vld [vmem:[%s1478_s10 + $0x30] sm:$0xff]  ;;  %v284_v31 = vld [vmem:[%s1465_s27 + $0x38] sm:$0xff]  ;;  %v286_v34 = vld [vmem:[%s1465_s27 + $0x48] sm:$0xff] }
  0x22   : > { %1204 = vmatprep.subr.msk.bf16.mxu1 %vm1486_vm1, %v1161_v19  ;;  %v1173_v33 = vpack.c.bf16 %v534_v30, %v533_v29  ;;  %v287_v35 = vld [vmem:[%s1465_s27 + $0x50] sm:$0xff]  ;;  %v535_v36 = vld [vmem:[%s1478_s10 + $0x40] sm:$0xff]  ;;  %v536_v37 = vld [vmem:[%s1478_s10 + $0x48] sm:$0xff] }
  0x23   : > { %1060 = vmatmul.mubr.msk.f32.vlgmr.msra.gmra.mrb[0].mxu0 %vm301_vm0, %v278_v20  ;;  %v288_v38 = vld [vmem:[%s1465_s27 + $0x58] sm:$0xff]  ;;  %v289_v39 = vld [vmem:[%s1465_s27 + $0x60] sm:$0xff]  ;;  %v1179_v40 = vpack.c.bf16 %v536_v37, %v535_v36  ;;  %v290_v41 = vld [vmem:[%s1465_s27 + $0x68] sm:$0xff] }
  0x24   : > { %1062 = vmatprep.mubr.msk.f32.mxu0 %vm301_vm0, %v279_v21  ;;  %v291_v42 = vld [vmem:[%s1465_s27 + $0x70] sm:$0xff]  ;;  %v538_v44 = vld [vmem:[%s1478_s10 + $0x58] sm:$0xff]  ;;  %v539_v47 = vld [vmem:[%s1478_s10 + $0x60] sm:$0xff]  ;;  %v544_v21 = vstv %s543_s11 }
  0x25   : > { %v537_v43 = vld [vmem:[%s1478_s10 + $0x50] sm:$0xff]  ;;  %v292_v45 = vld [vmem:[%s1465_s27 + $0x78] sm:$0xff]  ;;  %v540_v48 = vld [vmem:[%s1478_s10 + $0x68] sm:$0xff]  ;;  %s1276_s27 = scalar_lea.vmem %s1654_s16, 2048 }
  0x26   : > { %v1185_v46 = vpack.c.bf16 %v538_v44, %v537_v43  ;;  %v1191_v49 = vpack.c.bf16 %v540_v48, %v539_v47  ;;  %v541_v50 = vld [vmem:[%s1478_s10 + $0x70] sm:$0xff]  ;;  %v542_v51 = vld [vmem:[%s1478_s10 + $0x78] sm:$0xff]  ;;  %p1277_p12 = scmp.ne.s32.totalorder %s1654_s16, %s1276_s27  ;;  %p1284_p2 = scmp.lt.s32.totalorder %s1282_s6, %s1276_s27 }
  0x27   : > { %1063 = vmatmul.mubr.msk.f32.gmra.mrb[2].mxu0 %vm301_vm0, %v280_v24  ;;  %v1197_v52 = vpack.c.bf16 %v542_v51, %v541_v50 }
  0x28   : > { %1065 = vmatprep.mubr.msk.f32.mxu0 %vm301_vm0, %v281_v25  ;;  %p1278_p13 = pnand %p1277_p12, %p1427_p4  ;;  %p1285_p3 = por %p1284_p2, %p1283_p1 }
  0x29   : > { %1212 = vmatpush3.bf16.xpose.msk.msra.mxu1 %vm1486_vm1, %v1161_v19  ;;  %1160 = vmatpush3.bf16.xpose.msk.msra.mxu0 %vm1486_vm1, %v1155_v15 }
  0x2a   : > { %1205 = vmatprep.subr.msk.bf16.mxu1 %vm1486_vm1, %v1167_v26  ;;  %1163 = vmatprep.subr.msk.bf16.mxu0 %vm1486_vm1, %v1161_v19  ;;  %p1279_p0 = pneg %p1278_p13 }
  0x2b   : > { %1066 = vmatmul.mubr.msk.f32.gmra.mrb[4].mxu0 %vm301_vm0, %v282_v27 }
  0x2c   : > { %1068 = vmatprep.mubr.msk.f32.mxu0 %vm301_vm0, %v283_v28  ;;  %p1286_p5 = pnand %p1285_p3, %p1279_p0 }
  0x2f   : > { %1069 = vmatmul.mubr.msk.f32.gmra.mrb[6].mxu0 %vm301_vm0, %v284_v31 }
  0x30   : > { %1071 = vmatprep.mubr.msk.f32.mxu0 %vm301_vm0, %v285_v32 }
  0x31   : > { %1213 = vmatpush3.bf16.xpose.msk.msra.mxu1 %vm1486_vm1, %v1167_v26  ;;  %1166 = vmatpush3.bf16.xpose.msk.msra.mxu0 %vm1486_vm1, %v1161_v19 }
  0x32   : > { %1206 = vmatprep.subr.msk.bf16.mxu1 %vm1486_vm1, %v1173_v33  ;;  %1169 = vmatprep.subr.msk.bf16.mxu0 %vm1486_vm1, %v1167_v26 }
  0x33   : > { %1072 = vmatmul.mubr.msk.f32.gmra.mrb[8].mxu0 %vm301_vm0, %v286_v34 }
  0x34   : > { %1074 = vmatprep.mubr.msk.f32.mxu0 %vm301_vm0, %v287_v35 }
  0x37   : > { %1075 = vmatmul.mubr.msk.f32.gmra.mrb[10].mxu0 %vm301_vm0, %v288_v38 }
  0x38   : > { %1077 = vmatprep.mubr.msk.f32.mxu0 %vm301_vm0, %v289_v39 }
  0x39   : > { %1214 = vmatpush3.bf16.xpose.msk.msra.mxu1 %vm1486_vm1, %v1173_v33  ;;  %1172 = vmatpush3.bf16.xpose.msk.msra.mxu0 %vm1486_vm1, %v1167_v26 }
  0x3a   : > { %1207 = vmatprep.subr.msk.bf16.mxu1 %vm1486_vm1, %v1179_v40  ;;  %1175 = vmatprep.subr.msk.bf16.mxu0 %vm1486_vm1, %v1173_v33 }
  0x3b   : > { %1078 = vmatmul.mubr.msk.f32.gmra.mrb[12].mxu0 %vm301_vm0, %v290_v41 }
  0x3c   : > { %1080 = vmatprep.mubr.msk.f32.mxu0 %vm301_vm0, %v291_v42 }
  0x3f   : > { %1081 = vmatmul.mubr.msk.f32.gmra.mrb[14].mxu0 %vm301_vm0, %v292_v45 }
  0x41   : > { %1215 = vmatpush3.bf16.xpose.msk.msra.mxu1 %vm1486_vm1, %v1179_v40  ;;  %1178 = vmatpush3.bf16.xpose.msk.msra.mxu0 %vm1486_vm1, %v1173_v33 }
  0x42   : > { %1208 = vmatprep.subr.msk.bf16.mxu1 %vm1486_vm1, %v1185_v46  ;;  %1181 = vmatprep.subr.msk.bf16.mxu0 %vm1486_vm1, %v1179_v40 }
  0x49   : > { %1216 = vmatpush3.bf16.xpose.msk.msra.mxu1 %vm1486_vm1, %v1185_v46  ;;  %1184 = vmatpush3.bf16.xpose.msk.msra.mxu0 %vm1486_vm1, %v1179_v40 }
  0x4a   : > { %1209 = vmatprep.subr.msk.bf16.mxu1 %vm1486_vm1, %v1191_v49  ;;  %1187 = vmatprep.subr.msk.bf16.mxu0 %vm1486_vm1, %v1185_v46 }
  0x51   : > { %1217 = vmatpush3.bf16.xpose.msk.msra.mxu1 %vm1486_vm1, %v1191_v49  ;;  %1190 = vmatpush3.bf16.xpose.msk.msra.mxu0 %vm1486_vm1, %v1185_v46 }
  0x52   : > { %1193 = vmatprep.subr.msk.bf16.mxu0 %vm1486_vm1, %v1191_v49  ;;  %1210 = vmatprep.subr.msk.bf16.mxu1 %vm1486_vm1, %v1197_v52 }
  0x59   : > { %1196 = vmatpush3.bf16.xpose.msk.msra.mxu0 %vm1486_vm1, %v1191_v49  ;;  %1218 = vmatpush3.bf16.xpose.msk.msra.mxu1 %vm1486_vm1, %v1197_v52 }
  0x5a   : > { %1199 = vmatprep.subr.msk.bf16.mxu0 %vm1486_vm1, %v1197_v52 }
  0x61   : > { %1202 = vmatpush3.bf16.xpose.msk.msra.mxu0 %vm1486_vm1, %v1197_v52 }
  0xf6   : > { %v1061_v53 = vpop.f32.mrb[0].mxu0 }
  0xf7   : > { %496 = vst.msk [vmem:[#allocation2 + $0x8] sm:$0xff] %vm301_vm0, %v1061_v53  ;;  %v416_v54 = vpop.f32.mrb[1].mxu0 }
  0xf8   : > { %495 = vst.msk [vmem:[#allocation2] sm:$0xff] %vm301_vm0, %v416_v54 }
  0xfa   : > { %v1064_v55 = vpop.f32.mrb[2].mxu0 }
  0xfb   : > { %498 = vst.msk [vmem:[#allocation2 + $0x18] sm:$0xff] %vm301_vm0, %v1064_v55  ;;  %v426_v56 = vpop.f32.mrb[3].mxu0 }
  0xfc   : > { %497 = vst.msk [vmem:[#allocation2 + $0x10] sm:$0xff] %vm301_vm0, %v426_v56 }
  0xfe   : > { %v1067_v57 = vpop.f32.mrb[4].mxu0  ;;  %v512_v60 = vld [vmem:[#allocation2 + $0x8] sm:$0xff] }
  0xff   : > { %500 = vst.msk [vmem:[#allocation2 + $0x28] sm:$0xff] %vm301_vm0, %v1067_v57  ;;  %v436_v58 = vpop.f32.mrb[5].mxu0  ;;  %v511_v59 = vld [vmem:[#allocation2] sm:$0xff] }
 0x100   : > { %499 = vst.msk [vmem:[#allocation2 + $0x20] sm:$0xff] %vm301_vm0, %v436_v58  ;;  %1115 = vmatprep.mubr.msk.f32.mxu0 %vm301_vm0, %v511_v59 }
 0x101   : > { %1116 = vmatmul.mubr.msk.f32.vlgmr.msra.gmra.mrb[16].mxu0 %vm301_vm0, %v512_v60 }
 0x102   : > { %v1070_v61 = vpop.f32.mrb[6].mxu0  ;;  %v514_v0 = vld [vmem:[#allocation2 + $0x18] sm:$0xff] }
 0x103   : > { %502 = vst.msk [vmem:[#allocation2 + $0x38] sm:$0xff] %vm301_vm0, %v1070_v61  ;;  %v446_v62 = vpop.f32.mrb[7].mxu0  ;;  %v513_v63 = vld [vmem:[#allocation2 + $0x10] sm:$0xff] }
 0x104   : > { %501 = vst.msk [vmem:[#allocation2 + $0x30] sm:$0xff] %vm301_vm0, %v446_v62  ;;  %1118 = vmatprep.mubr.msk.f32.mxu0 %vm301_vm0, %v513_v63 }
 0x105   : > { %1119 = vmatmul.mubr.msk.f32.gmra.mrb[18].mxu0 %vm301_vm0, %v514_v0 }
 0x106   : > { %v1073_v1 = vpop.f32.mrb[8].mxu0  ;;  %v516_v4 = vld [vmem:[#allocation2 + $0x28] sm:$0xff] }
 0x107   : > { %504 = vst.msk [vmem:[#allocation2 + $0x48] sm:$0xff] %vm301_vm0, %v1073_v1  ;;  %v456_v2 = vpop.f32.mrb[9].mxu0  ;;  %v515_v3 = vld [vmem:[#allocation2 + $0x20] sm:$0xff] }
 0x108   : > { %503 = vst.msk [vmem:[#allocation2 + $0x40] sm:$0xff] %vm301_vm0, %v456_v2  ;;  %1121 = vmatprep.mubr.msk.f32.mxu1 %vm301_vm0, %v515_v3 }
 0x109   : > { %1122 = vmatmul.mubr.msk.f32.vlgmr.msra.gmra.mrb[0].mxu1 %vm301_vm0, %v516_v4 }
 0x10a   : > { %v1076_v5 = vpop.f32.mrb[10].mxu0  ;;  %v518_v8 = vld [vmem:[#allocation2 + $0x38] sm:$0xff] }
 0x10b   : > { %506 = vst.msk [vmem:[#allocation2 + $0x58] sm:$0xff] %vm301_vm0, %v1076_v5  ;;  %v466_v6 = vpop.f32.mrb[11].mxu0  ;;  %v517_v7 = vld [vmem:[#allocation2 + $0x30] sm:$0xff] }
 0x10c   : > { %505 = vst.msk [vmem:[#allocation2 + $0x50] sm:$0xff] %vm301_vm0, %v466_v6  ;;  %1124 = vmatprep.mubr.msk.f32.mxu1 %vm301_vm0, %v517_v7 }
 0x10d   : > { %1125 = vmatmul.mubr.msk.f32.gmra.mrb[2].mxu1 %vm301_vm0, %v518_v8 }
 0x10e   : > { %v1079_v9 = vpop.f32.mrb[12].mxu0  ;;  %v520_v12 = vld [vmem:[#allocation2 + $0x48] sm:$0xff] }
 0x10f   : > { %508 = vst.msk [vmem:[#allocation2 + $0x68] sm:$0xff] %vm301_vm0, %v1079_v9  ;;  %v476_v10 = vpop.f32.mrb[13].mxu0  ;;  %v519_v11 = vld [vmem:[#allocation2 + $0x40] sm:$0xff] }
 0x110   : > { %507 = vst.msk [vmem:[#allocation2 + $0x60] sm:$0xff] %vm301_vm0, %v476_v10  ;;  %1127 = vmatprep.mubr.msk.f32.mxu1 %vm301_vm0, %v519_v11 }
 0x111   : > { %1128 = vmatmul.mubr.msk.f32.gmra.mrb[4].mxu1 %vm301_vm0, %v520_v12 }
 0x112   : > { %v1082_v13 = vpop.f32.mrb[14].mxu0  ;;  %v522_v16 = vld [vmem:[#allocation2 + $0x58] sm:$0xff] }
 0x113   : > { %510 = vst.msk [vmem:[#allocation2 + $0x78] sm:$0xff] %vm301_vm0, %v1082_v13  ;;  %v486_v14 = vpop.f32.mrb[15].mxu0  ;;  %v521_v15 = vld [vmem:[#allocation2 + $0x50] sm:$0xff] }
 0x114   : > { %509 = vst.msk [vmem:[#allocation2 + $0x70] sm:$0xff] %vm301_vm0, %v486_v14  ;;  %1130 = vmatprep.mubr.msk.f32.mxu1 %vm301_vm0, %v521_v15 }
 0x115   : > { %1131 = vmatmul.mubr.msk.f32.gmra.mrb[6].mxu1 %vm301_vm0, %v522_v16 }
 0x116   : > { %v524_v18 = vld [vmem:[#allocation2 + $0x68] sm:$0xff] }
 0x117   : > { %v523_v17 = vld [vmem:[#allocation2 + $0x60] sm:$0xff] }
 0x118   : > { %1133 = vmatprep.mubr.msk.f32.mxu1 %vm301_vm0, %v523_v17 }
 0x119   : > { %1134 = vmatmul.mubr.msk.f32.gmra.mrb[8].mxu1 %vm301_vm0, %v524_v18 }
 0x11a   : > { %v526_v20 = vld [vmem:[#allocation2 + $0x78] sm:$0xff] }
 0x11b   : > { %v525_v19 = vld [vmem:[#allocation2 + $0x70] sm:$0xff] }
 0x11c   : > { %1136 = vmatprep.mubr.msk.f32.mxu1 %vm301_vm0, %v525_v19 }
 0x11d   : > { %1137 = vmatmul.mubr.msk.f32.gmra.mrb[10].mxu1 %vm301_vm0, %v526_v20 }
 0x1d4   : > { %v1117_v22 = vpop.f32.mrb[16].mxu0 }
 0x1d5   : > { %v714_v23 = vadd.f32 %v1117_v22, %v544_v21  ;;  %v708_v24 = vpop.f32.mrb[17].mxu0 }
 0x1d6   : > { %v709_v25 = vadd.f32 %v708_v24, %v544_v21 }
 0x1d7   : > { %788 = vst [vmem:[%s1631_s14 + $0x8] sm:$0xff] %v714_v23 }
 0x1d8   : > { %787 = vst [vmem:[%s1631_s14] sm:$0xff] %v709_v25  ;;  %v1120_v26 = vpop.f32.mrb[18].mxu0 }
 0x1d9   : > { %v724_v27 = vadd.f32 %v1120_v26, %v544_v21  ;;  %v718_v28 = vpop.f32.mrb[19].mxu0 }
 0x1da   : > { %v719_v29 = vadd.f32 %v718_v28, %v544_v21 }
 0x1db   : > { %790 = vst [vmem:[%s1631_s14 + $0x18] sm:$0xff] %v724_v27 }
 0x1dc   : > { %789 = vst [vmem:[%s1631_s14 + $0x10] sm:$0xff] %v719_v29  ;;  %v1123_v30 = vpop.f32.mrb[0].mxu1 }
 0x1dd   : > { %v734_v31 = vadd.f32 %v1123_v30, %v544_v21  ;;  %v728_v32 = vpop.f32.mrb[1].mxu1 }
 0x1de   : > { %v729_v33 = vadd.f32 %v728_v32, %v544_v21 }
 0x1df   : > { %792 = vst [vmem:[%s1631_s14 + $0x28] sm:$0xff] %v734_v31 }
 0x1e0   : > { %791 = vst [vmem:[%s1631_s14 + $0x20] sm:$0xff] %v729_v33  ;;  %v1126_v34 = vpop.f32.mrb[2].mxu1 }
 0x1e1   : > { %v744_v35 = vadd.f32 %v1126_v34, %v544_v21  ;;  %v738_v36 = vpop.f32.mrb[3].mxu1 }
 0x1e2   : > { %v739_v37 = vadd.f32 %v738_v36, %v544_v21 }
 0x1e3   : > { %794 = vst [vmem:[%s1631_s14 + $0x38] sm:$0xff] %v744_v35 }
 0x1e4   : > { %793 = vst [vmem:[%s1631_s14 + $0x30] sm:$0xff] %v739_v37  ;;  %v1129_v38 = vpop.f32.mrb[4].mxu1 }
 0x1e5   : > { %v754_v39 = vadd.f32 %v1129_v38, %v544_v21  ;;  %v748_v40 = vpop.f32.mrb[5].mxu1 }
 0x1e6   : > { %v749_v41 = vadd.f32 %v748_v40, %v544_v21 }
 0x1e7   : > { %796 = vst [vmem:[%s1631_s14 + $0x48] sm:$0xff] %v754_v39 }
 0x1e8   : > { %795 = vst [vmem:[%s1631_s14 + $0x40] sm:$0xff] %v749_v41  ;;  %v1132_v42 = vpop.f32.mrb[6].mxu1 }
 0x1e9   : > { %v764_v43 = vadd.f32 %v1132_v42, %v544_v21  ;;  %v758_v44 = vpop.f32.mrb[7].mxu1 }
 0x1ea   : > { %v759_v45 = vadd.f32 %v758_v44, %v544_v21 }
 0x1eb   : > { %798 = vst [vmem:[%s1631_s14 + $0x58] sm:$0xff] %v764_v43 }
 0x1ec   : > { %797 = vst [vmem:[%s1631_s14 + $0x50] sm:$0xff] %v759_v45  ;;  %v1135_v46 = vpop.f32.mrb[8].mxu1 }
 0x1ed   : > { %v774_v47 = vadd.f32 %v1135_v46, %v544_v21  ;;  %v768_v48 = vpop.f32.mrb[9].mxu1 }
 0x1ee   : > { %v769_v49 = vadd.f32 %v768_v48, %v544_v21 }
 0x1ef   : > { %800 = vst [vmem:[%s1631_s14 + $0x68] sm:$0xff] %v774_v47 }
 0x1f0   : > { %799 = vst [vmem:[%s1631_s14 + $0x60] sm:$0xff] %v769_v49  ;;  %v1138_v50 = vpop.f32.mrb[10].mxu1 }
 0x1f1   : > { %v784_v51 = vadd.f32 %v1138_v50, %v544_v21  ;;  %v778_v52 = vpop.f32.mrb[11].mxu1 }
 0x1f2   : > { %v779_v53 = vadd.f32 %v778_v52, %v544_v21 }
 0x1f3   : > { %802 = vst [vmem:[%s1631_s14 + $0x78] sm:$0xff] %v784_v51 }
 0x1f4   : > { %801 = vst [vmem:[%s1631_s14 + $0x70] sm:$0xff] %v779_v53 }
 0x1f5   : > { %1289 = shalt.err (!%p1286_p5)
}
 0x1f6   : > { %s1290_s7 = scalar_lea.hbm %s1652_s25, 2048  ;;  %s1294_s10 = scalar_lea.hbm %s1710_s4, 4096 }
 0x1f7   : > { %p1291_p6 = scmp.ne.s32.totalorder %s1652_s25, %s1290_s7  ;;  %p1295_p10 = scmp.lt.u32.totalorder %s1652_s25, %s1710_s4 }
 0x1f8   : > { %p1296_p11 = scmp.lt.u32.totalorder %s1294_s10, %s1290_s7  ;;  %p1298_p13 = scmp.lt.u32.totalorder %s1290_s7, %s1652_s25 }
 0x1f9   : > { %p1292_p7 = pnand %p1291_p6, %p1427_p4 }
 0x1fa   : > { %p1297_p12 = por %p1296_p11, %p1295_p10 }
 0x1fb   : > { %p1293_p9 = pneg %p1292_p7 }
 0x1fc   : > { %p1299_p0 = por %p1298_p13, %p1297_p12 }
 0x1fe   : > { %p1300_p1 = pnand %p1299_p0, %p1293_p9 }
 0x200   : > { %1303 = shalt.err (!%p1300_p1)
}
 0x201   : > { %s1357_s13 = smov 128   ;;  %s1358_s14 = smov 8  }
 0x202   : > { %1219 = dma.vmem_to_hbm [thread:$0]  (%p1427_p4), %s1654_s16, 2048, %s1652_s25, %s1660_s20, %s1357_s13, %s1357_s13, %s1358_s14  }
 0x203 PF: > { %p1225_p2 = scmp.ge.s32.totalorder %s1354_s22, 2  ;;  %s835_s15 = sand.u32 1, %s1334_s17  }
 0x204   : > { %s836_s3 = scalar_lea.sflag [#allocation5], %s835_s15 }
 0x205   : > { %p1222_p3 = pnand %p1225_p2, %p1434_p8 }
 0x207   : > { %1329 = dma.done.wait (!%p1222_p3), %s836_s3, 2048  }
 0x208   : > { %1331 = vsyncadd (!%p1222_p3), %s836_s3, 4294965248  ;;  %s18_s22 = sadd.s32 1, %s1354_s22   ;;  %s1715_s17 = smov %s1338_s18 }
 0x209   : > { %p15_p5 = scmp.ge.s32.totalorder %s18_s22, 4   ;;  %s1716_s18 = smov %s1342_s19 }
 0x20a   : > { %s1717_s19 = smov %s1440_s29  ;;  %s1718_s20 = smov %s1350_s21 }
 0x20b   : > { %s1719_s21 = smov %s1721_s24  ;;  %17 = sbr.rel (!%p15_p5) target bundleno = 6 (0x6), region = 78 }
 0x212   :  { %841 = vsyncpa [#allocation5], 1 }
 0x213   :  { %843 = vsyncpa [#allocation5 + $0x1], 1 }

</bundles_post_ra>
